<compile_context>
chip_gen: v7x
topology: tpu7x:2x2x1
jax: 0.10.0
libtpu: 0.0.40
codegen_flags: <defaults>
</compile_context>

<pallas_src>
import jax
import jax.numpy as jnp
from jax.experimental import pallas as pl
from jax.experimental.pallas import tpu as pltpu


def relu_conv1x1_kernel(x_ref, w_ref, o_ref):
    # x_ref: (C, HW) full activation block; w_ref: (TN, C) weight tile;
    # o_ref: (TN, HW) output tile.
    x = jnp.maximum(x_ref[...], 0.0)                      # fused ReLU (VPU)
    o_ref[...] = jnp.dot(
        w_ref[...], x, preferred_element_type=jnp.float32
    ).astype(o_ref.dtype)                                 # 1x1 conv == matmul (MXU)


def relu_conv2d_1x1(x_nchw, w_oihw, *, tn=512):
    """ReLU followed by 1x1 conv (stride 1, no bias). Matches PyTorch semantics."""
    N, C, H, W = x_nchw.shape
    O = w_oihw.shape[0]
    assert w_oihw.shape == (O, C, 1, 1)
    HW = H * W

    tn = min(tn, O)
    assert O % tn == 0

    # Free reshapes only — no transposes anywhere in the wrapper.
    x_r = x_nchw.reshape(N, C, HW)      # NCHW is already (N, C, H*W) contiguous
    w_mat = w_oihw.reshape(O, C)

    grid = (N, O // tn)

    out = pl.pallas_call(
        relu_conv1x1_kernel,
        out_shape=jax.ShapeDtypeStruct((N, O, HW), x_nchw.dtype),
        grid_spec=pltpu.PrefetchScalarGridSpec(
            num_scalar_prefetch=0,
            grid=grid,
            in_specs=[
                # activations: full (C, HW) block per batch element (batch dim squeezed)
                pl.BlockSpec((None, C, HW), lambda n, j: (n, 0, 0)),
                # weight tile over output channels (tn wide -> fills 256-wide MXU)
                pl.BlockSpec((tn, C), lambda n, j: (j, 0)),
            ],
            out_specs=pl.BlockSpec((None, tn, HW), lambda n, j: (n, j, 0)),
        ),
        compiler_params=pltpu.CompilerParams(
            dimension_semantics=("parallel", "parallel"),
        ),
    )(x_r, w_mat)

    # (N, O, H*W) -> NCHW, free reshape.
    return out.reshape(N, O, H, W)


if __name__ == "__main__":
    key = jax.random.PRNGKey(0)
    kx, kw = jax.random.split(key)

    # Shapes implied by the module: x [1, 256, 14, 14], conv weight [1024, 256, 1, 1]
    x = jax.random.normal(kx, (1, 256, 14, 14), dtype=jnp.float32)
    w = jax.random.normal(kw, (1024, 256, 1, 1), dtype=jnp.float32) * 0.05

    out = relu_conv2d_1x1(x, w)
    out = jax.block_until_ready(out)

    # Reference check against plain JAX (ReLU + 1x1 conv as matmul).
    x_relu = jnp.maximum(x, 0.0)
    ref = jnp.einsum("nchw,oc->nohw", x_relu, w.reshape(1024, 256))
    assert out.shape == (1, 1024, 14, 14)
    assert jnp.allclose(out, ref, atol=1e-4, rtol=1e-4)

    print("KERNEL_OK")
</pallas_src>

<mosaic_0001>
module attributes {stable_mosaic.version = 11 : i64} {
  func.func @relu_conv1x1_kernel(%arg0: i32, %arg1: i32, %arg2: memref<1x256x196xf32, #tpu.memory_space<vmem>>, %arg3: memref<512x256xf32, #tpu.memory_space<vmem>>, %arg4: memref<1x512x196xf32, #tpu.memory_space<vmem>>) attributes {dimension_semantics = [#tpu.dimension_semantics<parallel>, #tpu.dimension_semantics<parallel>], iteration_bounds = array<i64: 1, 2>, scalar_prefetch = 0 : i64, scratch_operands = 0 : i64, tpu.core_type = #tpu.core_type<tc>, window_params = [{transform_indices = @transform_0, window_bounds = array<i64: 1, 256, 196>}, {transform_indices = @transform_1, window_bounds = array<i64: 512, 256>}, {transform_indices = @transform_2, window_bounds = array<i64: 1, 512, 196>}]} {
    %c0 = arith.constant 0 : index
    %c0_0 = arith.constant 0 : index
    %c0_1 = arith.constant 0 : index
    %0 = vector.load %arg2[%c0, %c0_0, %c0_1] : memref<1x256x196xf32, #tpu.memory_space<vmem>>, vector<1x256x196xf32>
    %1 = vector.shape_cast %0 : vector<1x256x196xf32> to vector<256x196xf32>
    %cst = arith.constant 0.000000e+00 : f32
    %2 = vector.broadcast %cst : f32 to vector<256x196xf32>
    %3 = arith.maximumf %1, %2 : vector<256x196xf32>
    %c0_2 = arith.constant 0 : index
    %c0_3 = arith.constant 0 : index
    %4 = vector.load %arg3[%c0_2, %c0_3] : memref<512x256xf32, #tpu.memory_space<vmem>>, vector<512x256xf32>
    %cst_4 = arith.constant dense<0.000000e+00> : vector<512x196xf32>
    %5 = tpu.matmul %4, %3, %cst_4 {dimension_numbers = #tpu.dot_dimension_numbers<[1], [0], [0], [1], [0, 0, 1, 1], [], []>} : vector<512x256xf32>, vector<256x196xf32>, vector<512x196xf32> -> vector<512x196xf32>
    %c0_5 = arith.constant 0 : index
    %c0_6 = arith.constant 0 : index
    %c0_7 = arith.constant 0 : index
    %6 = vector.load %arg4[%c0_5, %c0_6, %c0_7] : memref<1x512x196xf32, #tpu.memory_space<vmem>>, vector<1x512x196xf32>
    %7 = vector.shape_cast %6 : vector<1x512x196xf32> to vector<512x196xf32>
    %8 = vector.shape_cast %5 : vector<512x196xf32> to vector<1x512x196xf32>
    tpu.vector_store %arg4[%c0_5, %c0_6, %c0_7], %8 {strides = array<i32>} : memref<1x512x196xf32, #tpu.memory_space<vmem>>, vector<1x512x196xf32>,
    return
  }
  func.func @transform_0(%arg0: i32, %arg1: i32) -> (i32, i32, i32) {
    %c0_i32 = arith.constant 0 : i32
    %c0_i32_0 = arith.constant 0 : i32
    %c0_i32_1 = arith.constant 0 : i32
    return %arg0, %c0_i32, %c0_i32_0 : i32, i32, i32
  }
  func.func @transform_1(%arg0: i32, %arg1: i32) -> (i32, i32) {
    %c0_i32 = arith.constant 0 : i32
    %c0_i32_0 = arith.constant 0 : i32
    return %arg1, %c0_i32 : i32, i32
  }
  func.func @transform_2(%arg0: i32, %arg1: i32) -> (i32, i32, i32) {
    %c0_i32 = arith.constant 0 : i32
    %c0_i32_0 = arith.constant 0 : i32
    return %arg0, %arg1, %c0_i32 : i32, i32, i32
  }
}

</mosaic_0001>

<bundles_post_ra>
// kernel: tpu_custom_call.1
= control target key start
LH: loop header
LB: loop body
LE: loop exit
PB: predicated region body
PF: predicated region fallthrough
CT: control target
= control target key end

     0   :  { %7 = vsyncpa [#allocation3], 0  ;;  %s2069_s0 = inlined_call_operand.vmem [shape: f32[1,256,196], index: 0, kind: input, shape index: {}]   ;;  %s2070_s1 = inlined_call_operand.hbm [shape: f32[1024,256], index: 1, kind: input, shape index: {}]   ;;  %s2071_s2 = inlined_call_operand.vmem [shape: f32[1,1024,196], index: 2, kind: output, shape index: {}]  }
   0x1   :  { %9 = vsyncpa [#allocation3 + $0x1], 0  ;;  %s1430_s9 = smov 0   ;;  %s1432_s10 = smov 0  }
   0x2   :  { %s1434_s11 = smov 0   ;;  %s1436_s12 = smov 0  }
   0x3   :  { %s1438_s13 = smov 0   ;;  %s1440_s14 = smov 0  }
   0x4 LB: > { %s1158_s15 = sadd.s32 4294967295, %s1410_s14   ;;  %s24_s16 = sadd.s32 1, %s1406_s13  ;;  %s1410_s14 = sphi %s1440_s14, %s15_s14   ;;  %s1406_s13 = sphi %s1438_s13, %s2079_s13   ;;  %s1402_s12 = sphi %s1436_s12, %s2078_s12   ;;  %s1398_s11 = sphi %s1434_s11, %s2077_s11   ;;  %s1394_s10 = sphi %s1432_s10, %s2076_s10   ;;  %s1390_s9 = sphi %s1430_s9, %s2075_s9  }
   0x5   : > { %p25_p0 = scmp.ge.s32.totalorder %s24_s16, 2  ;;  %s60_s17 = sadd.s32 1, %s1398_s11 }
   0x6   : > { %p67_p1 = scmp.ne.s32.totalorder %s1398_s11, %s1394_s10  ;;  %p68_p2 = scmp.eq.s32.totalorder %s1410_s14, 0 }
   0x7   : > { %s2081_s16 = smov (%p25_p0, %s24_s16), 0  ;;  %p73_p4 = scmp.ne.s32.totalorder %s1394_s10, %s1390_s9 }
   0x8   : > { %p1466_p3 = por %p68_p2, %p67_p1  ;;  %s57_s19 = ssub.s32 %s1406_s13, %s2081_s16 }
   0x9   : > { %p74_p5 = scmp.eq.s32.totalorder %s1158_s15, 0  ;;  %p58_p6 = scmp.eq.s32.totalorder %s57_s19, 0 }
   0xa   : > { %p1279_p8 = scmp.lt.s32.totalorder %s1410_s14, 2  ;;  %s133_s22 = sand.u32 1, %s1398_s11  }
   0xb   : > { %p1473_p7 = por %p74_p5, %p73_p4  ;;  %s1175_s23 = sshll.u32 %s1406_s13, 14 }
   0xc   : > { %s1479_s21 = scalar_select %p58_p6, %s1398_s11, %s60_s17  }
   0xd   : > { %s1163_s24 = sshll.u32 %s133_s22, 10  ;;  %s1486_s27 = scalar_lea.hbm %s2070_s1, %s1175_s23 }
   0xe   : > { %s137_s28 = scalar_lea.vmem [#allocation2], %s1163_s24  ;;  %p1490_p9 = pnand %p1279_p8, %p1466_p3 }
   0xf   : > { %s145_s29 = sshll.u32 %s137_s28, 4  ;;  %s1496_s3 = scalar_lea.sflag [#allocation3], %s133_s22  ;;  %s1494_s29 = int_to_ptr.vmem [resolvable:$true] %s145_s29 }
  0x10   : > { %s1330_s4 = scalar_lea.hbm %s1486_s27, 16384  ;;  %p1332_p11 = pneg %p1490_p9 }
  0x11   : > { %p1331_p10 = scmp.ne.s32.totalorder %s1486_s27, %s1330_s4  ;;  %s1335_s7 = scalar_lea.hbm %s2070_s1, 32768 }
  0x12   : > { %p1336_p0 = scmp.lt.u32.totalorder %s1486_s27, %s2070_s1  ;;  %p1337_p1 = scmp.lt.u32.totalorder %s1335_s7, %s1330_s4 }
  0x13   : > { %p1333_p12 = pnand %p1332_p11, %p1331_p10  ;;  %p1339_p3 = scmp.lt.u32.totalorder %s1330_s4, %s1486_s27 }
  0x14   : > { %p1338_p2 = por %p1337_p1, %p1336_p0 }
  0x15   : > { %p1334_p13 = pneg %p1333_p12 }
  0x16   : > { %p1340_p4 = por %p1339_p3, %p1338_p2 }
  0x18   : > { %p1341_p5 = pnand %p1340_p4, %p1334_p13 }
  0x1a   : > { %1344 = shalt.err (!%p1341_p5)
}
  0x1b   : > { %s1345_s15 = scalar_lea.vmem %s1494_s29, 16384  ;;  %s1412_s17 = smov [#allocation2]  }
  0x1c   : > { %p1346_p6 = scmp.ne.s32.totalorder %s1494_s29, %s1345_s15  ;;  %s1350_s18 = sshll.u32 %s1412_s17, 4  ;;  %s1351_s18 = int_to_ptr.vmem [resolvable:$false] %s1350_s18 }
  0x1d   : > { %s1352_s19 = scalar_lea.vmem %s1351_s18, 32768  ;;  %p1353_p12 = scmp.lt.s32.totalorder %s1494_s29, %s1351_s18 }
  0x1e   : > { %p1348_p8 = pnand %p1346_p6, %p1332_p11  ;;  %p1354_p0 = scmp.lt.s32.totalorder %s1352_s19, %s1345_s15 }
  0x20   : > { %p1349_p10 = pneg %p1348_p8  ;;  %p1355_p1 = por %p1354_p0, %p1353_p12 }
  0x22   : > { %p1356_p2 = pnand %p1355_p1, %p1349_p10 }
  0x24   : > { %1359 = shalt.err (!%p1356_p2)
}
  0x25   : > { %s1413_s22 = smov 256   ;;  %s1414_s23 = smov 16  }
  0x26   : > { %1278 = dma.hbm_to_vmem [thread:$0]  (!%p1490_p9), %s1486_s27, 16384, %s1494_s29, %s1496_s3, %s1413_s22, %s1413_s22, %s1414_s23  }
  0x27   : > { %p1167_p11 = scmp.ge.s32.totalorder %s1410_s14, 1  ;;  %p153_p13 = scmp.lt.s32.totalorder %s1410_s14, 3 }
  0x29   : > { %p154_p3 = pnand %p1167_p11, %p153_p13 }
  0x2a   : > { %s159_s24 = sand.u32 (!%p154_p3), 1, %s1394_s10  }
  0x2b   : > { %157 = sbr.rel (%p154_p3) target bundleno = 458 (0x1ca), region = 28  ;;  %s1168_s25 = sshll.u32 (!%p154_p3), %s159_s24, 10 }
  0x2c   : > { %s160_s26 = scalar_lea.sflag (!%p154_p3), [#allocation3], %s159_s24  ;;  %s1527_s28 = scalar_lea.vmem (!%p154_p3), [#allocation2], %s1168_s25 }
  0x32   : > { %1385 = dma.done.wait (%p1473_p7), %s160_s26, 16384  }
  0x33   : > { %1387 = vsyncadd (%p1473_p7), %s160_s26, 4294950912  ;;  %v212_v0 = vld [vmem:[%s2069_s0 + $0x8] sm:$0xff]  ;;  %v214_v1 = vld [vmem:[%s2069_s0 + $0x18] sm:$0xff]  ;;  %s1169_s20 = sshll.u32 %s1402_s12, 6  ;;  %vm917_vm0 = vcmask 556032  }
  0x34   : > { %v211_v2 = vld [vmem:[%s2069_s0] sm:$0xff]  ;;  %v276_v3 = vmax.f32 %v212_v0, 0.0  ;;  %v278_v4 = vmax.f32 %v214_v1, 0.0  ;;  %v213_v5 = vld [vmem:[%s2069_s0 + $0x10] sm:$0xff]  ;;  %v216_v7 = vld [vmem:[%s2069_s0 + $0x28] sm:$0xff]  ;;  %p203_p7 = scmp.lt.s32.totalorder %s1169_s20, 127 }
  0x35   : > { %v275_v6 = vmax.f32 %v211_v2, 0.0  ;;  %v218_v8 = vld [vmem:[%s2069_s0 + $0x38] sm:$0xff]  ;;  %v277_v9 = vmax.f32 %v213_v5, 0.0  ;;  %v280_v10 = vmax.f32 %v216_v7, 0.0  ;;  %v215_v12 = vld [vmem:[%s2069_s0 + $0x20] sm:$0xff]  ;;  %v217_v13 = vld [vmem:[%s2069_s0 + $0x30] sm:$0xff] }
  0x36   : > { %v282_v11 = vmax.f32 %v218_v8, 0.0  ;;  %v220_v14 = vld [vmem:[%s2069_s0 + $0x48] sm:$0xff]  ;;  %v1177_v15 = vpack.c.bf16 %v278_v4, %v276_v3  ;;  %v279_v16 = vmax.f32 %v215_v12, 0.0  ;;  %v281_v17 = vmax.f32 %v217_v13, 0.0  ;;  %v222_v18 = vld [vmem:[%s2069_s0 + $0x58] sm:$0xff]  ;;  %v219_v20 = vld [vmem:[%s2069_s0 + $0x40] sm:$0xff] }
  0x37   : > { %v284_v19 = vmax.f32 %v220_v14, 0.0  ;;  %v221_v21 = vld [vmem:[%s2069_s0 + $0x50] sm:$0xff]  ;;  %v1179_v22 = vpack.c.bf16 %v277_v9, %v275_v6  ;;  %v286_v24 = vmax.f32 %v222_v18, 0.0  ;;  %v224_v25 = vld [vmem:[%s2069_s0 + $0x68] sm:$0xff]  ;;  %v226_v26 = vld [vmem:[%s2069_s0 + $0x78] sm:$0xff]  ;;  %v283_v28 = vmax.f32 %v219_v20, 0.0 }
  0x38   : > { %v1181_v23 = vpack.c.bf16 %v282_v11, %v280_v10  ;;  %1178 = vmatprep.subr.bf16.mxu0 %v1177_v15  ;;  %1241 = vmatprep.subr.bf16.mxu1 %v1177_v15  ;;  %v1183_v27 = vpack.c.bf16 %v281_v17, %v279_v16  ;;  %v285_v29 = vmax.f32 %v221_v21, 0.0  ;;  %v288_v31 = vmax.f32 %v224_v25, 0.0  ;;  %v223_v33 = vld [vmem:[%s2069_s0 + $0x60] sm:$0xff]  ;;  %v225_v34 = vld [vmem:[%s2069_s0 + $0x70] sm:$0xff]  ;;  %v228_v35 = vld [vmem:[%s2069_s0 + $0x88] sm:$0xff]  ;;  %s2083_s20 = smov (!%p203_p7, %s1169_s20), 127 }
  0x39   : > { %1180 = vmatpush1.bf16.msra.mxu0 %v1179_v22  ;;  %1257 = vmatpush1.bf16.msra.mxu1 %v1179_v22  ;;  %v1185_v30 = vpack.c.bf16 %v286_v24, %v284_v19  ;;  %v290_v32 = vmax.f32 %v226_v26, 0.0  ;;  %v230_v36 = vld [vmem:[%s2069_s0 + $0x98] sm:$0xff]  ;;  %v287_v38 = vmax.f32 %v223_v33, 0.0  ;;  %v289_v39 = vmax.f32 %v225_v34, 0.0  ;;  %v227_v43 = vld [vmem:[%s2069_s0 + $0x80] sm:$0xff]  ;;  %v229_v44 = vld [vmem:[%s2069_s0 + $0x90] sm:$0xff] }
  0x3a   : > { %1182 = vmatprep.subr.bf16.mxu0 %v1181_v23  ;;  %1242 = vmatprep.subr.bf16.mxu1 %v1181_v23  ;;  %v1187_v37 = vpack.c.bf16 %v285_v29, %v283_v28  ;;  %v292_v41 = vmax.f32 %v228_v35, 0.0  ;;  %v294_v42 = vmax.f32 %v230_v36, 0.0  ;;  %v232_v45 = vld [vmem:[%s2069_s0 + $0xa8] sm:$0xff]  ;;  %v234_v46 = vld [vmem:[%s2069_s0 + $0xb8] sm:$0xff]  ;;  %v291_v48 = vmax.f32 %v227_v43, 0.0  ;;  %v231_v53 = vld [vmem:[%s2069_s0 + $0xa0] sm:$0xff] }
  0x3b   : > { %v1189_v40 = vpack.c.bf16 %v290_v32, %v288_v31  ;;  %v1191_v47 = vpack.c.bf16 %v289_v39, %v287_v38  ;;  %v293_v49 = vmax.f32 %v229_v44, 0.0  ;;  %v296_v51 = vmax.f32 %v232_v45, 0.0  ;;  %v233_v54 = vld [vmem:[%s2069_s0 + $0xb0] sm:$0xff]  ;;  %v236_v55 = vld [vmem:[%s2069_s0 + $0xc8] sm:$0xff]  ;;  %v238_v56 = vld [vmem:[%s2069_s0 + $0xd8] sm:$0xff]  ;;  %s1176_s8 = sshll.u32 %s2083_s20, 4 }
  0x3c   : > { %v1193_v50 = vpack.c.bf16 %v294_v42, %v292_v41  ;;  %v298_v52 = vmax.f32 %v234_v46, 0.0  ;;  %v295_v58 = vmax.f32 %v231_v53, 0.0  ;;  %v297_v59 = vmax.f32 %v233_v54, 0.0  ;;  %v235_v63 = vld [vmem:[%s2069_s0 + $0xc0] sm:$0xff]  ;;  %v237_v0 = vld [vmem:[%s2069_s0 + $0xd0] sm:$0xff]  ;;  %v240_v1 = vld [vmem:[%s2069_s0 + $0xe8] sm:$0xff]  ;;  %s1857_s17 = scalar_lea.vmem %s2071_s2, %s1176_s8 }
  0x3d   : > { %1184 = vmatpush1.bf16.msra.mxu0 %v1183_v27  ;;  %1258 = vmatpush1.bf16.msra.mxu1 %v1183_v27  ;;  %v1195_v57 = vpack.c.bf16 %v293_v49, %v291_v48  ;;  %v300_v61 = vmax.f32 %v236_v55, 0.0  ;;  %v302_v62 = vmax.f32 %v238_v56, 0.0  ;;  %v242_v2 = vld [vmem:[%s2069_s0 + $0xf8] sm:$0xff]  ;;  %v340_v3 = vld [vmem:[%s1527_s28 + $0x8] sm:$0xff]  ;;  %v299_v6 = vmax.f32 %v235_v63, 0.0  ;;  %v239_v11 = vld [vmem:[%s2069_s0 + $0xe0] sm:$0xff] }
  0x3e   : > { %1186 = vmatprep.subr.bf16.mxu0 %v1185_v30  ;;  %1243 = vmatprep.subr.bf16.mxu1 %v1185_v30  ;;  %v1197_v60 = vpack.c.bf16 %v298_v52, %v296_v51  ;;  %v404_v4 = vld [vmem:[%s1527_s28 + $0x208] sm:$0xff]  ;;  %v1199_v5 = vpack.c.bf16 %v297_v59, %v295_v58  ;;  %v301_v7 = vmax.f32 %v237_v0, 0.0  ;;  %v304_v9 = vmax.f32 %v240_v1, 0.0  ;;  %v241_v12 = vld [vmem:[%s2069_s0 + $0xf0] sm:$0xff]  ;;  %v246_v14 = vld [vmem:[%s2069_s0 + $0x118] sm:$0xff] }
  0x3f   : > { %v1201_v8 = vpack.c.bf16 %v302_v62, %v300_v61  ;;  %v306_v10 = vmax.f32 %v242_v2, 0.0  ;;  %v244_v13 = vld [vmem:[%s2069_s0 + $0x108] sm:$0xff]  ;;  %531 = vmatprep.mubr.f32.mxu0 %v340_v3  ;;  %723 = vmatprep.mubr.f32.mxu1 %v404_v4  ;;  %v303_v16 = vmax.f32 %v239_v11, 0.0  ;;  %v305_v17 = vmax.f32 %v241_v12, 0.0  ;;  %v243_v21 = vld [vmem:[%s2069_s0 + $0x100] sm:$0xff]  ;;  %v245_v22 = vld [vmem:[%s2069_s0 + $0x110] sm:$0xff] }
  0x40   : > { %v1203_v15 = vpack.c.bf16 %v301_v7, %v299_v6  ;;  %v308_v19 = vmax.f32 %v244_v13, 0.0  ;;  %v310_v20 = vmax.f32 %v246_v14, 0.0  ;;  %v248_v23 = vld [vmem:[%s2069_s0 + $0x128] sm:$0xff]  ;;  %v250_v24 = vld [vmem:[%s2069_s0 + $0x138] sm:$0xff]  ;;  %v307_v26 = vmax.f32 %v243_v21, 0.0  ;;  %v247_v31 = vld [vmem:[%s2069_s0 + $0x120] sm:$0xff] }
  0x41   : > { %1188 = vmatpush1.bf16.msra.mxu0 %v1187_v37  ;;  %1259 = vmatpush1.bf16.msra.mxu1 %v1187_v37  ;;  %v1205_v18 = vpack.c.bf16 %v306_v10, %v304_v9  ;;  %v1207_v25 = vpack.c.bf16 %v305_v17, %v303_v16  ;;  %v309_v27 = vmax.f32 %v245_v22, 0.0  ;;  %v312_v29 = vmax.f32 %v248_v23, 0.0  ;;  %v249_v32 = vld [vmem:[%s2069_s0 + $0x130] sm:$0xff]  ;;  %v252_v33 = vld [vmem:[%s2069_s0 + $0x148] sm:$0xff]  ;;  %v254_v34 = vld [vmem:[%s2069_s0 + $0x158] sm:$0xff] }
  0x42   : > { %1190 = vmatprep.subr.bf16.mxu0 %v1189_v40  ;;  %1244 = vmatprep.subr.bf16.mxu1 %v1189_v40  ;;  %v1209_v28 = vpack.c.bf16 %v310_v20, %v308_v19  ;;  %v314_v30 = vmax.f32 %v250_v24, 0.0  ;;  %v311_v36 = vmax.f32 %v247_v31, 0.0  ;;  %v313_v37 = vmax.f32 %v249_v32, 0.0  ;;  %v251_v41 = vld [vmem:[%s2069_s0 + $0x140] sm:$0xff]  ;;  %v253_v42 = vld [vmem:[%s2069_s0 + $0x150] sm:$0xff]  ;;  %v256_v43 = vld [vmem:[%s2069_s0 + $0x168] sm:$0xff] }
  0x43   : > { %v1211_v35 = vpack.c.bf16 %v309_v27, %v307_v26  ;;  %v316_v39 = vmax.f32 %v252_v33, 0.0  ;;  %v318_v40 = vmax.f32 %v254_v34, 0.0  ;;  %v258_v44 = vld [vmem:[%s2069_s0 + $0x178] sm:$0xff]  ;;  %v315_v46 = vmax.f32 %v251_v41, 0.0  ;;  %v255_v51 = vld [vmem:[%s2069_s0 + $0x160] sm:$0xff]  ;;  %v257_v52 = vld [vmem:[%s2069_s0 + $0x170] sm:$0xff] }
  0x44   : > { %v1213_v38 = vpack.c.bf16 %v314_v30, %v312_v29  ;;  %v1215_v45 = vpack.c.bf16 %v313_v37, %v311_v36  ;;  %v320_v49 = vmax.f32 %v256_v43, 0.0  ;;  %v260_v53 = vld [vmem:[%s2069_s0 + $0x188] sm:$0xff]  ;;  %v262_v54 = vld [vmem:[%s2069_s0 + $0x198] sm:$0xff]  ;;  %v319_v56 = vmax.f32 %v255_v51, 0.0  ;;  %v259_v61 = vld [vmem:[%s2069_s0 + $0x180] sm:$0xff] }
  0x45   : > { %1192 = vmatpush1.bf16.msra.mxu0 %v1191_v47  ;;  %1260 = vmatpush1.bf16.msra.mxu1 %v1191_v47  ;;  %v317_v47 = vmax.f32 %v253_v42, 0.0  ;;  %v1217_v48 = vpack.c.bf16 %v318_v40, %v316_v39  ;;  %v324_v59 = vmax.f32 %v260_v53, 0.0  ;;  %v261_v62 = vld [vmem:[%s2069_s0 + $0x190] sm:$0xff]  ;;  %v264_v63 = vld [vmem:[%s2069_s0 + $0x1a8] sm:$0xff]  ;;  %v266_v0 = vld [vmem:[%s2069_s0 + $0x1b8] sm:$0xff]  ;;  %v323_v2 = vmax.f32 %v259_v61, 0.0 }
  0x46   : > { %1194 = vmatprep.subr.bf16.mxu0 %v1193_v50  ;;  %1245 = vmatprep.subr.bf16.mxu1 %v1193_v50  ;;  %v322_v50 = vmax.f32 %v258_v44, 0.0  ;;  %v325_v3 = vmax.f32 %v261_v62, 0.0  ;;  %v330_v6 = vmax.f32 %v266_v0, 0.0  ;;  %v263_v7 = vld [vmem:[%s2069_s0 + $0x1a0] sm:$0xff]  ;;  %v268_v9 = vld [vmem:[%s2069_s0 + $0x1c8] sm:$0xff]  ;;  %v270_v10 = vld [vmem:[%s2069_s0 + $0x1d8] sm:$0xff] }
  0x47   : > { %v1219_v55 = vpack.c.bf16 %v317_v47, %v315_v46  ;;  %v327_v12 = vmax.f32 %v263_v7, 0.0  ;;  %v334_v16 = vmax.f32 %v270_v10, 0.0  ;;  %v267_v17 = vld [vmem:[%s2069_s0 + $0x1c0] sm:$0xff]  ;;  %v272_v19 = vld [vmem:[%s2069_s0 + $0x1e8] sm:$0xff]  ;;  %v274_v20 = vld [vmem:[%s2069_s0 + $0x1f8] sm:$0xff] }
  0x48   : > { %v1221_v58 = vpack.c.bf16 %v322_v50, %v320_v49  ;;  %v1227_v11 = vpack.c.bf16 %v325_v3, %v323_v2  ;;  %v331_v22 = vmax.f32 %v267_v17, 0.0  ;;  %v338_v26 = vmax.f32 %v274_v20, 0.0  ;;  %v271_v27 = vld [vmem:[%s2069_s0 + $0x1e0] sm:$0xff]  ;;  %v342_v36 = vld [vmem:[%s1527_s28 + $0x18] sm:$0xff]  ;;  %v405_v39 = vld [vmem:[%s1527_s28 + $0x210] sm:$0xff] }
  0x49   : > { %1196 = vmatpush1.bf16.msra.mxu0 %v1195_v57  ;;  %1261 = vmatpush1.bf16.msra.mxu1 %v1195_v57  ;;  %v321_v57 = vmax.f32 %v257_v52, 0.0  ;;  %v335_v30 = vmax.f32 %v271_v27, 0.0  ;;  %v339_v34 = vld [vmem:[%s1527_s28] sm:$0xff]  ;;  %v406_v37 = vld [vmem:[%s1527_s28 + $0x218] sm:$0xff]  ;;  %v344_v40 = vld [vmem:[%s1527_s28 + $0x28] sm:$0xff] }
  0x4a   : > { %1198 = vmatprep.subr.bf16.mxu0 %v1197_v60  ;;  %1246 = vmatprep.subr.bf16.mxu1 %v1197_v60  ;;  %v326_v60 = vmax.f32 %v262_v54, 0.0  ;;  %v408_v41 = vld [vmem:[%s1527_s28 + $0x228] sm:$0xff]  ;;  %v343_v42 = vld [vmem:[%s1527_s28 + $0x20] sm:$0xff]  ;;  %v346_v44 = vld [vmem:[%s1527_s28 + $0x38] sm:$0xff] }
  0x4b   : > { %v1223_v1 = vpack.c.bf16 %v321_v57, %v319_v56  ;;  %v407_v43 = vld [vmem:[%s1527_s28 + $0x220] sm:$0xff]  ;;  %v345_v46 = vld [vmem:[%s1527_s28 + $0x30] sm:$0xff]  ;;  %v412_v49 = vld [vmem:[%s1527_s28 + $0x248] sm:$0xff] }
  0x4c   : > { %v1225_v4 = vpack.c.bf16 %v326_v60, %v324_v59  ;;  %v409_v47 = vld [vmem:[%s1527_s28 + $0x230] sm:$0xff]  ;;  %v347_v50 = vld [vmem:[%s1527_s28 + $0x40] sm:$0xff]  ;;  %v350_v52 = vld [vmem:[%s1527_s28 + $0x58] sm:$0xff] }
  0x4d   : > { %1200 = vmatpush1.bf16.msra.mxu0 %v1199_v5  ;;  %1262 = vmatpush1.bf16.msra.mxu1 %v1199_v5  ;;  %v328_v5 = vmax.f32 %v264_v63, 0.0  ;;  %v411_v51 = vld [vmem:[%s1527_s28 + $0x240] sm:$0xff]  ;;  %v414_v53 = vld [vmem:[%s1527_s28 + $0x258] sm:$0xff]  ;;  %v349_v54 = vld [vmem:[%s1527_s28 + $0x50] sm:$0xff] }
  0x4e   : > { %1202 = vmatprep.subr.bf16.mxu0 %v1201_v8  ;;  %1247 = vmatprep.subr.bf16.mxu1 %v1201_v8  ;;  %v265_v8 = vld [vmem:[%s2069_s0 + $0x1b0] sm:$0xff]  ;;  %v352_v56 = vld [vmem:[%s1527_s28 + $0x68] sm:$0xff]  ;;  %v415_v59 = vld [vmem:[%s1527_s28 + $0x260] sm:$0xff] }
  0x4f   : > { %v329_v13 = vmax.f32 %v265_v8, 0.0  ;;  %v1229_v14 = vpack.c.bf16 %v330_v6, %v328_v5  ;;  %v416_v57 = vld [vmem:[%s1527_s28 + $0x268] sm:$0xff]  ;;  %v354_v60 = vld [vmem:[%s1527_s28 + $0x78] sm:$0xff]  ;;  %v353_v62 = vld [vmem:[%s1527_s28 + $0x70] sm:$0xff] }
  0x50   : > { %v418_v61 = vld [vmem:[%s1527_s28 + $0x278] sm:$0xff]  ;;  %v417_v63 = vld [vmem:[%s1527_s28 + $0x270] sm:$0xff]  ;;  %v356_v0 = vld [vmem:[%s1527_s28 + $0x88] sm:$0xff] }
  0x51   : > { %1204 = vmatpush1.bf16.msra.mxu0 %v1203_v15  ;;  %1263 = vmatpush1.bf16.msra.mxu1 %v1203_v15  ;;  %v332_v15 = vmax.f32 %v268_v9, 0.0  ;;  %v1231_v21 = vpack.c.bf16 %v329_v13, %v327_v12  ;;  %v355_v2 = vld [vmem:[%s1527_s28 + $0x80] sm:$0xff]  ;;  %v422_v5 = vld [vmem:[%s1527_s28 + $0x298] sm:$0xff]  ;;  %v357_v6 = vld [vmem:[%s1527_s28 + $0x90] sm:$0xff] }
  0x52   : > { %1206 = vmatprep.subr.bf16.mxu0 %v1205_v18  ;;  %1248 = vmatprep.subr.bf16.mxu1 %v1205_v18  ;;  %v269_v18 = vld [vmem:[%s2069_s0 + $0x1d0] sm:$0xff]  ;;  %v419_v3 = vld [vmem:[%s1527_s28 + $0x280] sm:$0xff]  ;;  %v360_v8 = vld [vmem:[%s1527_s28 + $0xa8] sm:$0xff] }
  0x53   : > { %v333_v23 = vmax.f32 %v269_v18, 0.0  ;;  %v1233_v24 = vpack.c.bf16 %v334_v16, %v332_v15  ;;  %v421_v7 = vld [vmem:[%s1527_s28 + $0x290] sm:$0xff]  ;;  %v424_v9 = vld [vmem:[%s1527_s28 + $0x2a8] sm:$0xff]  ;;  %v359_v10 = vld [vmem:[%s1527_s28 + $0xa0] sm:$0xff] }
  0x54   : > { %v362_v12 = vld [vmem:[%s1527_s28 + $0xb8] sm:$0xff]  ;;  %v425_v15 = vld [vmem:[%s1527_s28 + $0x2b0] sm:$0xff]  ;;  %v364_v16 = vld [vmem:[%s1527_s28 + $0xc8] sm:$0xff] }
  0x55   : > { %1208 = vmatpush1.bf16.msra.mxu0 %v1207_v25  ;;  %1264 = vmatpush1.bf16.msra.mxu1 %v1207_v25  ;;  %v336_v25 = vmax.f32 %v272_v19, 0.0  ;;  %v1235_v29 = vpack.c.bf16 %v333_v23, %v331_v22  ;;  %v426_v13 = vld [vmem:[%s1527_s28 + $0x2b8] sm:$0xff]  ;;  %v428_v17 = vld [vmem:[%s1527_s28 + $0x2c8] sm:$0xff]  ;;  %v363_v18 = vld [vmem:[%s1527_s28 + $0xc0] sm:$0xff] }
  0x56   : > { %1210 = vmatprep.subr.bf16.mxu0 %v1209_v28  ;;  %1249 = vmatprep.subr.bf16.mxu1 %v1209_v28  ;;  %v273_v28 = vld [vmem:[%s2069_s0 + $0x1f0] sm:$0xff]  ;;  %v427_v19 = vld [vmem:[%s1527_s28 + $0x2c0] sm:$0xff]  ;;  %v366_v20 = vld [vmem:[%s1527_s28 + $0xd8] sm:$0xff] }
  0x57   : > { %v337_v31 = vmax.f32 %v273_v28, 0.0  ;;  %v1237_v32 = vpack.c.bf16 %v338_v26, %v336_v25  ;;  %v365_v22 = vld [vmem:[%s1527_s28 + $0xd0] sm:$0xff]  ;;  %v432_v25 = vld [vmem:[%s1527_s28 + $0x2e8] sm:$0xff]  ;;  %v367_v26 = vld [vmem:[%s1527_s28 + $0xe0] sm:$0xff] }
  0x58   : > { %v429_v23 = vld [vmem:[%s1527_s28 + $0x2d0] sm:$0xff]  ;;  %v431_v27 = vld [vmem:[%s1527_s28 + $0x2e0] sm:$0xff]  ;;  %v370_v28 = vld [vmem:[%s1527_s28 + $0xf8] sm:$0xff] }
  0x59   : > { %1212 = vmatpush1.bf16.msra.mxu0 %v1211_v35  ;;  %1265 = vmatpush1.bf16.msra.mxu1 %v1211_v35  ;;  %v1239_v33 = vpack.c.bf16 %v337_v31, %v335_v30  ;;  %v403_v35 = vld [vmem:[%s1527_s28 + $0x200] sm:$0xff]  ;;  %v369_v30 = vld [vmem:[%s1527_s28 + $0xf0] sm:$0xff] }
  0x5a   : > { %1214 = vmatprep.subr.bf16.mxu0 %v1213_v38  ;;  %1250 = vmatprep.subr.bf16.mxu1 %v1213_v38  ;;  %v341_v38 = vld [vmem:[%s1527_s28 + $0x10] sm:$0xff] }
  0x5b   : > { %v433_v31 = vld [vmem:[%s1527_s28 + $0x2f0] sm:$0xff] }
  0x5d   : > { %1216 = vmatpush1.bf16.msra.mxu0 %v1215_v45  ;;  %1266 = vmatpush1.bf16.msra.mxu1 %v1215_v45  ;;  %v410_v45 = vld [vmem:[%s1527_s28 + $0x238] sm:$0xff] }
  0x5e   : > { %1218 = vmatprep.subr.bf16.mxu0 %v1217_v48  ;;  %1251 = vmatprep.subr.bf16.mxu1 %v1217_v48  ;;  %v348_v48 = vld [vmem:[%s1527_s28 + $0x48] sm:$0xff] }
  0x61   : > { %1220 = vmatpush1.bf16.msra.mxu0 %v1219_v55  ;;  %1267 = vmatpush1.bf16.msra.mxu1 %v1219_v55  ;;  %v413_v55 = vld [vmem:[%s1527_s28 + $0x250] sm:$0xff] }
  0x62   : > { %1222 = vmatprep.subr.bf16.mxu0 %v1221_v58  ;;  %1252 = vmatprep.subr.bf16.mxu1 %v1221_v58  ;;  %v351_v58 = vld [vmem:[%s1527_s28 + $0x60] sm:$0xff] }
  0x65   : > { %1224 = vmatpush1.bf16.msra.mxu0 %v1223_v1  ;;  %1268 = vmatpush1.bf16.msra.mxu1 %v1223_v1  ;;  %v420_v1 = vld [vmem:[%s1527_s28 + $0x288] sm:$0xff] }
  0x66   : > { %1226 = vmatprep.subr.bf16.mxu0 %v1225_v4  ;;  %1253 = vmatprep.subr.bf16.mxu1 %v1225_v4  ;;  %v358_v4 = vld [vmem:[%s1527_s28 + $0x98] sm:$0xff] }
  0x69   : > { %1228 = vmatpush1.bf16.msra.mxu0 %v1227_v11  ;;  %1269 = vmatpush1.bf16.msra.mxu1 %v1227_v11  ;;  %v423_v11 = vld [vmem:[%s1527_s28 + $0x2a0] sm:$0xff] }
  0x6a   : > { %1230 = vmatprep.subr.bf16.mxu0 %v1229_v14  ;;  %1254 = vmatprep.subr.bf16.mxu1 %v1229_v14  ;;  %v361_v14 = vld [vmem:[%s1527_s28 + $0xb0] sm:$0xff] }
  0x6d   : > { %1232 = vmatpush1.bf16.msra.mxu0 %v1231_v21  ;;  %1270 = vmatpush1.bf16.msra.mxu1 %v1231_v21  ;;  %v430_v21 = vld [vmem:[%s1527_s28 + $0x2d8] sm:$0xff] }
  0x6e   : > { %1234 = vmatprep.subr.bf16.mxu0 %v1233_v24  ;;  %1255 = vmatprep.subr.bf16.mxu1 %v1233_v24  ;;  %v368_v24 = vld [vmem:[%s1527_s28 + $0xe8] sm:$0xff] }
  0x71   : > { %1236 = vmatpush1.bf16.msra.mxu0 %v1235_v29  ;;  %1271 = vmatpush1.bf16.msra.mxu1 %v1235_v29  ;;  %v434_v29 = vld [vmem:[%s1527_s28 + $0x2f8] sm:$0xff] }
  0x72   : > { %1238 = vmatprep.subr.bf16.mxu0 %v1237_v32  ;;  %1256 = vmatprep.subr.bf16.mxu1 %v1237_v32  ;;  %v372_v32 = vld [vmem:[%s1527_s28 + $0x108] sm:$0xff] }
  0x75   : > { %1240 = vmatpush1.bf16.msra.mxu0 %v1239_v33  ;;  %1272 = vmatpush1.bf16.msra.mxu1 %v1239_v33  ;;  %v436_v33 = vld [vmem:[%s1527_s28 + $0x308] sm:$0xff] }
  0x78   : > { %532 = vmatmul.mubr.f32.vlgmr.msra.gmra.mrb[0].mxu0 %v339_v34  ;;  %724 = vmatmul.mubr.f32.vlgmr.msra.gmra.mrb[0].mxu1 %v403_v35  ;;  %v371_v34 = vld [vmem:[%s1527_s28 + $0x100] sm:$0xff] }
  0x79   : > { %537 = vmatprep.mubr.f32.mxu0 %v342_v36  ;;  %729 = vmatprep.mubr.f32.mxu1 %v406_v37  ;;  %v435_v35 = vld [vmem:[%s1527_s28 + $0x300] sm:$0xff]  ;;  %v374_v36 = vld [vmem:[%s1527_s28 + $0x118] sm:$0xff] }
  0x7a   : > { %v438_v37 = vld [vmem:[%s1527_s28 + $0x318] sm:$0xff] }
  0x7c   : > { %538 = vmatmul.mubr.f32.gmra.mrb[2].mxu0 %v341_v38  ;;  %730 = vmatmul.mubr.f32.gmra.mrb[2].mxu1 %v405_v39  ;;  %v373_v38 = vld [vmem:[%s1527_s28 + $0x110] sm:$0xff] }
  0x7d   : > { %543 = vmatprep.mubr.f32.mxu0 %v344_v40  ;;  %735 = vmatprep.mubr.f32.mxu1 %v408_v41  ;;  %v437_v39 = vld [vmem:[%s1527_s28 + $0x310] sm:$0xff]  ;;  %v376_v40 = vld [vmem:[%s1527_s28 + $0x128] sm:$0xff] }
  0x7e   : > { %v440_v41 = vld [vmem:[%s1527_s28 + $0x328] sm:$0xff] }
  0x80   : > { %544 = vmatmul.mubr.f32.gmra.mrb[4].mxu0 %v343_v42  ;;  %736 = vmatmul.mubr.f32.gmra.mrb[4].mxu1 %v407_v43  ;;  %v375_v42 = vld [vmem:[%s1527_s28 + $0x120] sm:$0xff] }
  0x81   : > { %549 = vmatprep.mubr.f32.mxu0 %v346_v44  ;;  %741 = vmatprep.mubr.f32.mxu1 %v410_v45  ;;  %v439_v43 = vld [vmem:[%s1527_s28 + $0x320] sm:$0xff]  ;;  %v378_v44 = vld [vmem:[%s1527_s28 + $0x138] sm:$0xff] }
  0x82   : > { %v442_v45 = vld [vmem:[%s1527_s28 + $0x338] sm:$0xff] }
  0x84   : > { %550 = vmatmul.mubr.f32.gmra.mrb[6].mxu0 %v345_v46  ;;  %742 = vmatmul.mubr.f32.gmra.mrb[6].mxu1 %v409_v47  ;;  %v377_v46 = vld [vmem:[%s1527_s28 + $0x130] sm:$0xff] }
  0x85   : > { %555 = vmatprep.mubr.f32.mxu0 %v348_v48  ;;  %747 = vmatprep.mubr.f32.mxu1 %v412_v49  ;;  %v441_v47 = vld [vmem:[%s1527_s28 + $0x330] sm:$0xff]  ;;  %v380_v48 = vld [vmem:[%s1527_s28 + $0x148] sm:$0xff] }
  0x86   : > { %v444_v49 = vld [vmem:[%s1527_s28 + $0x348] sm:$0xff] }
  0x88   : > { %556 = vmatmul.mubr.f32.gmra.mrb[8].mxu0 %v347_v50  ;;  %748 = vmatmul.mubr.f32.gmra.mrb[8].mxu1 %v411_v51  ;;  %v379_v50 = vld [vmem:[%s1527_s28 + $0x140] sm:$0xff] }
  0x89   : > { %561 = vmatprep.mubr.f32.mxu0 %v350_v52  ;;  %753 = vmatprep.mubr.f32.mxu1 %v414_v53  ;;  %v443_v51 = vld [vmem:[%s1527_s28 + $0x340] sm:$0xff]  ;;  %v382_v52 = vld [vmem:[%s1527_s28 + $0x158] sm:$0xff] }
  0x8a   : > { %v446_v53 = vld [vmem:[%s1527_s28 + $0x358] sm:$0xff] }
  0x8c   : > { %562 = vmatmul.mubr.f32.gmra.mrb[10].mxu0 %v349_v54  ;;  %754 = vmatmul.mubr.f32.gmra.mrb[10].mxu1 %v413_v55  ;;  %v381_v54 = vld [vmem:[%s1527_s28 + $0x150] sm:$0xff] }
  0x8d   : > { %567 = vmatprep.mubr.f32.mxu0 %v352_v56  ;;  %759 = vmatprep.mubr.f32.mxu1 %v416_v57  ;;  %v445_v55 = vld [vmem:[%s1527_s28 + $0x350] sm:$0xff]  ;;  %v384_v56 = vld [vmem:[%s1527_s28 + $0x168] sm:$0xff] }
  0x8e   : > { %v448_v57 = vld [vmem:[%s1527_s28 + $0x368] sm:$0xff] }
  0x90   : > { %568 = vmatmul.mubr.f32.gmra.mrb[12].mxu0 %v351_v58  ;;  %760 = vmatmul.mubr.f32.gmra.mrb[12].mxu1 %v415_v59  ;;  %v383_v58 = vld [vmem:[%s1527_s28 + $0x160] sm:$0xff] }
  0x91   : > { %573 = vmatprep.mubr.f32.mxu0 %v354_v60  ;;  %765 = vmatprep.mubr.f32.mxu1 %v418_v61  ;;  %v447_v59 = vld [vmem:[%s1527_s28 + $0x360] sm:$0xff]  ;;  %v386_v60 = vld [vmem:[%s1527_s28 + $0x178] sm:$0xff] }
  0x92   : > { %v450_v61 = vld [vmem:[%s1527_s28 + $0x378] sm:$0xff] }
  0x94   : > { %574 = vmatmul.mubr.f32.gmra.mrb[14].mxu0 %v353_v62  ;;  %766 = vmatmul.mubr.f32.gmra.mrb[14].mxu1 %v417_v63  ;;  %v385_v62 = vld [vmem:[%s1527_s28 + $0x170] sm:$0xff] }
  0x95   : > { %579 = vmatprep.mubr.f32.mxu0 %v356_v0  ;;  %771 = vmatprep.mubr.f32.mxu1 %v420_v1  ;;  %v449_v63 = vld [vmem:[%s1527_s28 + $0x370] sm:$0xff]  ;;  %v388_v0 = vld [vmem:[%s1527_s28 + $0x188] sm:$0xff] }
  0x96   : > { %v452_v1 = vld [vmem:[%s1527_s28 + $0x388] sm:$0xff] }
  0x98   : > { %580 = vmatmul.mubr.f32.gmra.mrb[16].mxu0 %v355_v2  ;;  %772 = vmatmul.mubr.f32.gmra.mrb[16].mxu1 %v419_v3  ;;  %v387_v2 = vld [vmem:[%s1527_s28 + $0x180] sm:$0xff] }
  0x99   : > { %585 = vmatprep.mubr.f32.mxu0 %v358_v4  ;;  %777 = vmatprep.mubr.f32.mxu1 %v422_v5  ;;  %v451_v3 = vld [vmem:[%s1527_s28 + $0x380] sm:$0xff]  ;;  %v390_v4 = vld [vmem:[%s1527_s28 + $0x198] sm:$0xff] }
  0x9a   : > { %v454_v5 = vld [vmem:[%s1527_s28 + $0x398] sm:$0xff] }
  0x9c   : > { %586 = vmatmul.mubr.f32.gmra.mrb[18].mxu0 %v357_v6  ;;  %778 = vmatmul.mubr.f32.gmra.mrb[18].mxu1 %v421_v7  ;;  %v389_v6 = vld [vmem:[%s1527_s28 + $0x190] sm:$0xff] }
  0x9d   : > { %591 = vmatprep.mubr.f32.mxu0 %v360_v8  ;;  %783 = vmatprep.mubr.f32.mxu1 %v424_v9  ;;  %v453_v7 = vld [vmem:[%s1527_s28 + $0x390] sm:$0xff]  ;;  %v392_v8 = vld [vmem:[%s1527_s28 + $0x1a8] sm:$0xff] }
  0x9e   : > { %v456_v9 = vld [vmem:[%s1527_s28 + $0x3a8] sm:$0xff] }
  0xa0   : > { %592 = vmatmul.mubr.f32.gmra.mrb[20].mxu0 %v359_v10  ;;  %784 = vmatmul.mubr.f32.gmra.mrb[20].mxu1 %v423_v11  ;;  %v391_v10 = vld [vmem:[%s1527_s28 + $0x1a0] sm:$0xff] }
  0xa1   : > { %597 = vmatprep.mubr.f32.mxu0 %v362_v12  ;;  %789 = vmatprep.mubr.f32.mxu1 %v426_v13  ;;  %v455_v11 = vld [vmem:[%s1527_s28 + $0x3a0] sm:$0xff]  ;;  %v394_v12 = vld [vmem:[%s1527_s28 + $0x1b8] sm:$0xff] }
  0xa2   : > { %v458_v13 = vld [vmem:[%s1527_s28 + $0x3b8] sm:$0xff] }
  0xa4   : > { %598 = vmatmul.mubr.f32.gmra.mrb[22].mxu0 %v361_v14  ;;  %790 = vmatmul.mubr.f32.gmra.mrb[22].mxu1 %v425_v15  ;;  %v393_v14 = vld [vmem:[%s1527_s28 + $0x1b0] sm:$0xff] }
  0xa5   : > { %603 = vmatprep.mubr.f32.mxu0 %v364_v16  ;;  %795 = vmatprep.mubr.f32.mxu1 %v428_v17  ;;  %v457_v15 = vld [vmem:[%s1527_s28 + $0x3b0] sm:$0xff]  ;;  %v396_v16 = vld [vmem:[%s1527_s28 + $0x1c8] sm:$0xff] }
  0xa6   : > { %v460_v17 = vld [vmem:[%s1527_s28 + $0x3c8] sm:$0xff] }
  0xa8   : > { %604 = vmatmul.mubr.f32.gmra.mrb[24].mxu0 %v363_v18  ;;  %796 = vmatmul.mubr.f32.gmra.mrb[24].mxu1 %v427_v19  ;;  %v395_v18 = vld [vmem:[%s1527_s28 + $0x1c0] sm:$0xff] }
  0xa9   : > { %609 = vmatprep.mubr.f32.mxu0 %v366_v20  ;;  %801 = vmatprep.mubr.f32.mxu1 %v430_v21  ;;  %v459_v19 = vld [vmem:[%s1527_s28 + $0x3c0] sm:$0xff]  ;;  %v398_v20 = vld [vmem:[%s1527_s28 + $0x1d8] sm:$0xff] }
  0xaa   : > { %v462_v21 = vld [vmem:[%s1527_s28 + $0x3d8] sm:$0xff] }
  0xac   : > { %610 = vmatmul.mubr.f32.gmra.mrb[26].mxu0 %v365_v22  ;;  %802 = vmatmul.mubr.f32.gmra.mrb[26].mxu1 %v429_v23  ;;  %v397_v22 = vld [vmem:[%s1527_s28 + $0x1d0] sm:$0xff] }
  0xad   : > { %615 = vmatprep.mubr.f32.mxu0 %v368_v24  ;;  %807 = vmatprep.mubr.f32.mxu1 %v432_v25  ;;  %v461_v23 = vld [vmem:[%s1527_s28 + $0x3d0] sm:$0xff]  ;;  %v400_v24 = vld [vmem:[%s1527_s28 + $0x1e8] sm:$0xff] }
  0xae   : > { %v464_v25 = vld [vmem:[%s1527_s28 + $0x3e8] sm:$0xff] }
  0xb0   : > { %616 = vmatmul.mubr.f32.gmra.mrb[28].mxu0 %v367_v26  ;;  %808 = vmatmul.mubr.f32.gmra.mrb[28].mxu1 %v431_v27  ;;  %v399_v26 = vld [vmem:[%s1527_s28 + $0x1e0] sm:$0xff] }
  0xb1   : > { %621 = vmatprep.mubr.f32.mxu0 %v370_v28  ;;  %813 = vmatprep.mubr.f32.mxu1 %v434_v29  ;;  %v463_v27 = vld [vmem:[%s1527_s28 + $0x3e0] sm:$0xff]  ;;  %v402_v28 = vld [vmem:[%s1527_s28 + $0x1f8] sm:$0xff] }
  0xb2   : > { %v466_v29 = vld [vmem:[%s1527_s28 + $0x3f8] sm:$0xff] }
  0xb4   : > { %622 = vmatmul.mubr.f32.gmra.mrb[30].mxu0 %v369_v30  ;;  %814 = vmatmul.mubr.f32.gmra.mrb[30].mxu1 %v433_v31  ;;  %v401_v30 = vld [vmem:[%s1527_s28 + $0x1f0] sm:$0xff] }
  0xb5   : > { %627 = vmatprep.mubr.f32.mxu0 %v372_v32  ;;  %819 = vmatprep.mubr.f32.mxu1 %v436_v33  ;;  %v465_v31 = vld [vmem:[%s1527_s28 + $0x3f0] sm:$0xff] }
  0xb8   : > { %628 = vmatmul.mubr.f32.gmra.mrb[32].mxu0 %v371_v34  ;;  %820 = vmatmul.mubr.f32.gmra.mrb[32].mxu1 %v435_v35 }
  0xb9   : > { %633 = vmatprep.mubr.f32.mxu0 %v374_v36  ;;  %825 = vmatprep.mubr.f32.mxu1 %v438_v37 }
  0xbc   : > { %634 = vmatmul.mubr.f32.gmra.mrb[34].mxu0 %v373_v38  ;;  %826 = vmatmul.mubr.f32.gmra.mrb[34].mxu1 %v437_v39 }
  0xbd   : > { %639 = vmatprep.mubr.f32.mxu0 %v376_v40  ;;  %831 = vmatprep.mubr.f32.mxu1 %v440_v41 }
  0xc0   : > { %640 = vmatmul.mubr.f32.gmra.mrb[36].mxu0 %v375_v42  ;;  %832 = vmatmul.mubr.f32.gmra.mrb[36].mxu1 %v439_v43 }
  0xc1   : > { %645 = vmatprep.mubr.f32.mxu0 %v378_v44  ;;  %837 = vmatprep.mubr.f32.mxu1 %v442_v45 }
  0xc4   : > { %646 = vmatmul.mubr.f32.gmra.mrb[38].mxu0 %v377_v46  ;;  %838 = vmatmul.mubr.f32.gmra.mrb[38].mxu1 %v441_v47 }
  0xc5   : > { %651 = vmatprep.mubr.f32.mxu0 %v380_v48  ;;  %843 = vmatprep.mubr.f32.mxu1 %v444_v49 }
  0xc8   : > { %652 = vmatmul.mubr.f32.gmra.mrb[40].mxu0 %v379_v50  ;;  %844 = vmatmul.mubr.f32.gmra.mrb[40].mxu1 %v443_v51 }
  0xc9   : > { %657 = vmatprep.mubr.f32.mxu0 %v382_v52  ;;  %849 = vmatprep.mubr.f32.mxu1 %v446_v53 }
  0xcc   : > { %658 = vmatmul.mubr.f32.gmra.mrb[42].mxu0 %v381_v54  ;;  %850 = vmatmul.mubr.f32.gmra.mrb[42].mxu1 %v445_v55 }
  0xcd   : > { %663 = vmatprep.mubr.f32.mxu0 %v384_v56  ;;  %855 = vmatprep.mubr.f32.mxu1 %v448_v57 }
  0xd0   : > { %664 = vmatmul.mubr.f32.gmra.mrb[44].mxu0 %v383_v58  ;;  %856 = vmatmul.mubr.f32.gmra.mrb[44].mxu1 %v447_v59 }
  0xd1   : > { %669 = vmatprep.mubr.f32.mxu0 %v386_v60  ;;  %861 = vmatprep.mubr.f32.mxu1 %v450_v61 }
  0xd4   : > { %670 = vmatmul.mubr.f32.gmra.mrb[46].mxu0 %v385_v62  ;;  %862 = vmatmul.mubr.f32.gmra.mrb[46].mxu1 %v449_v63 }
  0xd5   : > { %675 = vmatprep.mubr.f32.mxu0 %v388_v0  ;;  %867 = vmatprep.mubr.f32.mxu1 %v452_v1 }
  0xd8   : > { %676 = vmatmul.mubr.f32.gmra.mrb[48].mxu0 %v387_v2  ;;  %868 = vmatmul.mubr.f32.gmra.mrb[48].mxu1 %v451_v3 }
  0xd9   : > { %681 = vmatprep.mubr.f32.mxu0 %v390_v4  ;;  %873 = vmatprep.mubr.f32.mxu1 %v454_v5 }
  0xdc   : > { %682 = vmatmul.mubr.f32.gmra.mrb[50].mxu0 %v389_v6  ;;  %874 = vmatmul.mubr.f32.gmra.mrb[50].mxu1 %v453_v7 }
  0xdd   : > { %687 = vmatprep.mubr.f32.mxu0 %v392_v8  ;;  %879 = vmatprep.mubr.f32.mxu1 %v456_v9 }
  0xe0   : > { %688 = vmatmul.mubr.f32.gmra.mrb[52].mxu0 %v391_v10  ;;  %880 = vmatmul.mubr.f32.gmra.mrb[52].mxu1 %v455_v11 }
  0xe1   : > { %693 = vmatprep.mubr.f32.mxu0 %v394_v12  ;;  %885 = vmatprep.mubr.f32.mxu1 %v458_v13 }
  0xe4   : > { %694 = vmatmul.mubr.f32.gmra.mrb[54].mxu0 %v393_v14  ;;  %886 = vmatmul.mubr.f32.gmra.mrb[54].mxu1 %v457_v15 }
  0xe5   : > { %699 = vmatprep.mubr.f32.mxu0 %v396_v16  ;;  %891 = vmatprep.mubr.f32.mxu1 %v460_v17 }
  0xe8   : > { %700 = vmatmul.mubr.f32.gmra.mrb[56].mxu0 %v395_v18  ;;  %892 = vmatmul.mubr.f32.gmra.mrb[56].mxu1 %v459_v19 }
  0xe9   : > { %705 = vmatprep.mubr.f32.mxu0 %v398_v20  ;;  %897 = vmatprep.mubr.f32.mxu1 %v462_v21 }
  0xec   : > { %706 = vmatmul.mubr.f32.gmra.mrb[58].mxu0 %v397_v22  ;;  %898 = vmatmul.mubr.f32.gmra.mrb[58].mxu1 %v461_v23 }
  0xed   : > { %711 = vmatprep.mubr.f32.mxu0 %v400_v24  ;;  %903 = vmatprep.mubr.f32.mxu1 %v464_v25 }
  0xf0   : > { %712 = vmatmul.mubr.f32.gmra.mrb[60].mxu0 %v399_v26  ;;  %904 = vmatmul.mubr.f32.gmra.mrb[60].mxu1 %v463_v27 }
  0xf1   : > { %717 = vmatprep.mubr.f32.mxu0 %v402_v28  ;;  %909 = vmatprep.mubr.f32.mxu1 %v466_v29 }
  0xf4   : > { %718 = vmatmul.mubr.f32.gmra.mrb[62].mxu0 %v401_v30  ;;  %910 = vmatmul.mubr.f32.gmra.mrb[62].mxu1 %v465_v31 }
 0x14b   : > { %v533_v32 = vpop.f32.mrb[0].mxu0  ;;  %v725_v33 = vpop.f32.mrb[0].mxu1 }
 0x14c   : > { %916 = vst [vmem:[%s1857_s17] sm:$0xff] %v533_v32  ;;  %981 = vst [vmem:[%s1857_s17 + $0x200] sm:$0xff] %v725_v33  ;;  %v535_v34 = vpop.f32.mrb[1].mxu0  ;;  %v727_v35 = vpop.f32.mrb[1].mxu1 }
 0x14d   : > { %918 = vst.msk [vmem:[%s1857_s17 + $0x8] sm:$0xff] %vm917_vm0, %v535_v34  ;;  %982 = vst.msk [vmem:[%s1857_s17 + $0x208] sm:$0xff] %vm917_vm0, %v727_v35 }
 0x14f   : > { %v539_v36 = vpop.f32.mrb[2].mxu0  ;;  %v731_v37 = vpop.f32.mrb[2].mxu1 }
 0x150   : > { %919 = vst [vmem:[%s1857_s17 + $0x10] sm:$0xff] %v539_v36  ;;  %983 = vst [vmem:[%s1857_s17 + $0x210] sm:$0xff] %v731_v37  ;;  %v541_v38 = vpop.f32.mrb[3].mxu0  ;;  %v733_v39 = vpop.f32.mrb[3].mxu1 }
 0x151   : > { %920 = vst.msk [vmem:[%s1857_s17 + $0x18] sm:$0xff] %vm917_vm0, %v541_v38  ;;  %984 = vst.msk [vmem:[%s1857_s17 + $0x218] sm:$0xff] %vm917_vm0, %v733_v39 }
 0x153   : > { %v545_v40 = vpop.f32.mrb[4].mxu0  ;;  %v737_v41 = vpop.f32.mrb[4].mxu1 }
 0x154   : > { %921 = vst [vmem:[%s1857_s17 + $0x20] sm:$0xff] %v545_v40  ;;  %985 = vst [vmem:[%s1857_s17 + $0x220] sm:$0xff] %v737_v41  ;;  %v547_v42 = vpop.f32.mrb[5].mxu0  ;;  %v739_v43 = vpop.f32.mrb[5].mxu1 }
 0x155   : > { %922 = vst.msk [vmem:[%s1857_s17 + $0x28] sm:$0xff] %vm917_vm0, %v547_v42  ;;  %986 = vst.msk [vmem:[%s1857_s17 + $0x228] sm:$0xff] %vm917_vm0, %v739_v43 }
 0x157   : > { %v551_v44 = vpop.f32.mrb[6].mxu0  ;;  %v743_v45 = vpop.f32.mrb[6].mxu1 }
 0x158   : > { %923 = vst [vmem:[%s1857_s17 + $0x30] sm:$0xff] %v551_v44  ;;  %987 = vst [vmem:[%s1857_s17 + $0x230] sm:$0xff] %v743_v45  ;;  %v553_v46 = vpop.f32.mrb[7].mxu0  ;;  %v745_v47 = vpop.f32.mrb[7].mxu1 }
 0x159   : > { %924 = vst.msk [vmem:[%s1857_s17 + $0x38] sm:$0xff] %vm917_vm0, %v553_v46  ;;  %988 = vst.msk [vmem:[%s1857_s17 + $0x238] sm:$0xff] %vm917_vm0, %v745_v47 }
 0x15b   : > { %v557_v48 = vpop.f32.mrb[8].mxu0  ;;  %v749_v49 = vpop.f32.mrb[8].mxu1 }
 0x15c   : > { %925 = vst [vmem:[%s1857_s17 + $0x40] sm:$0xff] %v557_v48  ;;  %989 = vst [vmem:[%s1857_s17 + $0x240] sm:$0xff] %v749_v49  ;;  %v559_v50 = vpop.f32.mrb[9].mxu0  ;;  %v751_v51 = vpop.f32.mrb[9].mxu1 }
 0x15d   : > { %926 = vst.msk [vmem:[%s1857_s17 + $0x48] sm:$0xff] %vm917_vm0, %v559_v50  ;;  %990 = vst.msk [vmem:[%s1857_s17 + $0x248] sm:$0xff] %vm917_vm0, %v751_v51 }
 0x15f   : > { %v563_v52 = vpop.f32.mrb[10].mxu0  ;;  %v755_v53 = vpop.f32.mrb[10].mxu1 }
 0x160   : > { %927 = vst [vmem:[%s1857_s17 + $0x50] sm:$0xff] %v563_v52  ;;  %991 = vst [vmem:[%s1857_s17 + $0x250] sm:$0xff] %v755_v53  ;;  %v565_v54 = vpop.f32.mrb[11].mxu0  ;;  %v757_v55 = vpop.f32.mrb[11].mxu1 }
 0x161   : > { %928 = vst.msk [vmem:[%s1857_s17 + $0x58] sm:$0xff] %vm917_vm0, %v565_v54  ;;  %992 = vst.msk [vmem:[%s1857_s17 + $0x258] sm:$0xff] %vm917_vm0, %v757_v55 }
 0x163   : > { %v569_v56 = vpop.f32.mrb[12].mxu0  ;;  %v761_v57 = vpop.f32.mrb[12].mxu1 }
 0x164   : > { %929 = vst [vmem:[%s1857_s17 + $0x60] sm:$0xff] %v569_v56  ;;  %993 = vst [vmem:[%s1857_s17 + $0x260] sm:$0xff] %v761_v57  ;;  %v571_v58 = vpop.f32.mrb[13].mxu0  ;;  %v763_v59 = vpop.f32.mrb[13].mxu1 }
 0x165   : > { %930 = vst.msk [vmem:[%s1857_s17 + $0x68] sm:$0xff] %vm917_vm0, %v571_v58  ;;  %994 = vst.msk [vmem:[%s1857_s17 + $0x268] sm:$0xff] %vm917_vm0, %v763_v59 }
 0x167   : > { %v575_v60 = vpop.f32.mrb[14].mxu0  ;;  %v767_v61 = vpop.f32.mrb[14].mxu1 }
 0x168   : > { %931 = vst [vmem:[%s1857_s17 + $0x70] sm:$0xff] %v575_v60  ;;  %995 = vst [vmem:[%s1857_s17 + $0x270] sm:$0xff] %v767_v61  ;;  %v577_v62 = vpop.f32.mrb[15].mxu0  ;;  %v769_v63 = vpop.f32.mrb[15].mxu1 }
 0x169   : > { %932 = vst.msk [vmem:[%s1857_s17 + $0x78] sm:$0xff] %vm917_vm0, %v577_v62  ;;  %996 = vst.msk [vmem:[%s1857_s17 + $0x278] sm:$0xff] %vm917_vm0, %v769_v63 }
 0x16b   : > { %v581_v0 = vpop.f32.mrb[16].mxu0  ;;  %v773_v1 = vpop.f32.mrb[16].mxu1 }
 0x16c   : > { %933 = vst [vmem:[%s1857_s17 + $0x80] sm:$0xff] %v581_v0  ;;  %997 = vst [vmem:[%s1857_s17 + $0x280] sm:$0xff] %v773_v1  ;;  %v583_v2 = vpop.f32.mrb[17].mxu0  ;;  %v775_v3 = vpop.f32.mrb[17].mxu1 }
 0x16d   : > { %934 = vst.msk [vmem:[%s1857_s17 + $0x88] sm:$0xff] %vm917_vm0, %v583_v2  ;;  %998 = vst.msk [vmem:[%s1857_s17 + $0x288] sm:$0xff] %vm917_vm0, %v775_v3 }
 0x16f   : > { %v587_v4 = vpop.f32.mrb[18].mxu0  ;;  %v779_v5 = vpop.f32.mrb[18].mxu1 }
 0x170   : > { %935 = vst [vmem:[%s1857_s17 + $0x90] sm:$0xff] %v587_v4  ;;  %999 = vst [vmem:[%s1857_s17 + $0x290] sm:$0xff] %v779_v5  ;;  %v589_v6 = vpop.f32.mrb[19].mxu0  ;;  %v781_v7 = vpop.f32.mrb[19].mxu1 }
 0x171   : > { %936 = vst.msk [vmem:[%s1857_s17 + $0x98] sm:$0xff] %vm917_vm0, %v589_v6  ;;  %1000 = vst.msk [vmem:[%s1857_s17 + $0x298] sm:$0xff] %vm917_vm0, %v781_v7 }
 0x173   : > { %v593_v8 = vpop.f32.mrb[20].mxu0  ;;  %v785_v9 = vpop.f32.mrb[20].mxu1 }
 0x174   : > { %937 = vst [vmem:[%s1857_s17 + $0xa0] sm:$0xff] %v593_v8  ;;  %1001 = vst [vmem:[%s1857_s17 + $0x2a0] sm:$0xff] %v785_v9  ;;  %v595_v10 = vpop.f32.mrb[21].mxu0  ;;  %v787_v11 = vpop.f32.mrb[21].mxu1 }
 0x175   : > { %938 = vst.msk [vmem:[%s1857_s17 + $0xa8] sm:$0xff] %vm917_vm0, %v595_v10  ;;  %1002 = vst.msk [vmem:[%s1857_s17 + $0x2a8] sm:$0xff] %vm917_vm0, %v787_v11 }
 0x177   : > { %v599_v12 = vpop.f32.mrb[22].mxu0  ;;  %v791_v13 = vpop.f32.mrb[22].mxu1 }
 0x178   : > { %939 = vst [vmem:[%s1857_s17 + $0xb0] sm:$0xff] %v599_v12  ;;  %1003 = vst [vmem:[%s1857_s17 + $0x2b0] sm:$0xff] %v791_v13  ;;  %v601_v14 = vpop.f32.mrb[23].mxu0  ;;  %v793_v15 = vpop.f32.mrb[23].mxu1 }
 0x179   : > { %940 = vst.msk [vmem:[%s1857_s17 + $0xb8] sm:$0xff] %vm917_vm0, %v601_v14  ;;  %1004 = vst.msk [vmem:[%s1857_s17 + $0x2b8] sm:$0xff] %vm917_vm0, %v793_v15 }
 0x17b   : > { %v605_v16 = vpop.f32.mrb[24].mxu0  ;;  %v797_v17 = vpop.f32.mrb[24].mxu1 }
 0x17c   : > { %941 = vst [vmem:[%s1857_s17 + $0xc0] sm:$0xff] %v605_v16  ;;  %1005 = vst [vmem:[%s1857_s17 + $0x2c0] sm:$0xff] %v797_v17  ;;  %v607_v18 = vpop.f32.mrb[25].mxu0  ;;  %v799_v19 = vpop.f32.mrb[25].mxu1 }
 0x17d   : > { %942 = vst.msk [vmem:[%s1857_s17 + $0xc8] sm:$0xff] %vm917_vm0, %v607_v18  ;;  %1006 = vst.msk [vmem:[%s1857_s17 + $0x2c8] sm:$0xff] %vm917_vm0, %v799_v19 }
 0x17f   : > { %v611_v20 = vpop.f32.mrb[26].mxu0  ;;  %v803_v21 = vpop.f32.mrb[26].mxu1 }
 0x180   : > { %943 = vst [vmem:[%s1857_s17 + $0xd0] sm:$0xff] %v611_v20  ;;  %1007 = vst [vmem:[%s1857_s17 + $0x2d0] sm:$0xff] %v803_v21  ;;  %v613_v22 = vpop.f32.mrb[27].mxu0  ;;  %v805_v23 = vpop.f32.mrb[27].mxu1 }
 0x181   : > { %944 = vst.msk [vmem:[%s1857_s17 + $0xd8] sm:$0xff] %vm917_vm0, %v613_v22  ;;  %1008 = vst.msk [vmem:[%s1857_s17 + $0x2d8] sm:$0xff] %vm917_vm0, %v805_v23 }
 0x183   : > { %v617_v24 = vpop.f32.mrb[28].mxu0  ;;  %v809_v25 = vpop.f32.mrb[28].mxu1 }
 0x184   : > { %945 = vst [vmem:[%s1857_s17 + $0xe0] sm:$0xff] %v617_v24  ;;  %1009 = vst [vmem:[%s1857_s17 + $0x2e0] sm:$0xff] %v809_v25  ;;  %v619_v26 = vpop.f32.mrb[29].mxu0  ;;  %v811_v27 = vpop.f32.mrb[29].mxu1 }
 0x185   : > { %946 = vst.msk [vmem:[%s1857_s17 + $0xe8] sm:$0xff] %vm917_vm0, %v619_v26  ;;  %1010 = vst.msk [vmem:[%s1857_s17 + $0x2e8] sm:$0xff] %vm917_vm0, %v811_v27 }
 0x187   : > { %v623_v28 = vpop.f32.mrb[30].mxu0  ;;  %v815_v29 = vpop.f32.mrb[30].mxu1 }
 0x188   : > { %947 = vst [vmem:[%s1857_s17 + $0xf0] sm:$0xff] %v623_v28  ;;  %1011 = vst [vmem:[%s1857_s17 + $0x2f0] sm:$0xff] %v815_v29  ;;  %v625_v30 = vpop.f32.mrb[31].mxu0  ;;  %v817_v31 = vpop.f32.mrb[31].mxu1 }
 0x189   : > { %948 = vst.msk [vmem:[%s1857_s17 + $0xf8] sm:$0xff] %vm917_vm0, %v625_v30  ;;  %1012 = vst.msk [vmem:[%s1857_s17 + $0x2f8] sm:$0xff] %vm917_vm0, %v817_v31 }
 0x18b   : > { %v629_v32 = vpop.f32.mrb[32].mxu0  ;;  %v821_v33 = vpop.f32.mrb[32].mxu1 }
 0x18c   : > { %949 = vst [vmem:[%s1857_s17 + $0x100] sm:$0xff] %v629_v32  ;;  %1013 = vst [vmem:[%s1857_s17 + $0x300] sm:$0xff] %v821_v33  ;;  %v631_v34 = vpop.f32.mrb[33].mxu0  ;;  %v823_v35 = vpop.f32.mrb[33].mxu1 }
 0x18d   : > { %950 = vst.msk [vmem:[%s1857_s17 + $0x108] sm:$0xff] %vm917_vm0, %v631_v34  ;;  %1014 = vst.msk [vmem:[%s1857_s17 + $0x308] sm:$0xff] %vm917_vm0, %v823_v35 }
 0x18f   : > { %v635_v36 = vpop.f32.mrb[34].mxu0  ;;  %v827_v37 = vpop.f32.mrb[34].mxu1 }
 0x190   : > { %951 = vst [vmem:[%s1857_s17 + $0x110] sm:$0xff] %v635_v36  ;;  %1015 = vst [vmem:[%s1857_s17 + $0x310] sm:$0xff] %v827_v37  ;;  %v637_v38 = vpop.f32.mrb[35].mxu0  ;;  %v829_v39 = vpop.f32.mrb[35].mxu1 }
 0x191   : > { %952 = vst.msk [vmem:[%s1857_s17 + $0x118] sm:$0xff] %vm917_vm0, %v637_v38  ;;  %1016 = vst.msk [vmem:[%s1857_s17 + $0x318] sm:$0xff] %vm917_vm0, %v829_v39 }
 0x193   : > { %v641_v40 = vpop.f32.mrb[36].mxu0  ;;  %v833_v41 = vpop.f32.mrb[36].mxu1 }
 0x194   : > { %953 = vst [vmem:[%s1857_s17 + $0x120] sm:$0xff] %v641_v40  ;;  %1017 = vst [vmem:[%s1857_s17 + $0x320] sm:$0xff] %v833_v41  ;;  %v643_v42 = vpop.f32.mrb[37].mxu0  ;;  %v835_v43 = vpop.f32.mrb[37].mxu1 }
 0x195   : > { %954 = vst.msk [vmem:[%s1857_s17 + $0x128] sm:$0xff] %vm917_vm0, %v643_v42  ;;  %1018 = vst.msk [vmem:[%s1857_s17 + $0x328] sm:$0xff] %vm917_vm0, %v835_v43 }
 0x197   : > { %v647_v44 = vpop.f32.mrb[38].mxu0  ;;  %v839_v45 = vpop.f32.mrb[38].mxu1 }
 0x198   : > { %955 = vst [vmem:[%s1857_s17 + $0x130] sm:$0xff] %v647_v44  ;;  %1019 = vst [vmem:[%s1857_s17 + $0x330] sm:$0xff] %v839_v45  ;;  %v649_v46 = vpop.f32.mrb[39].mxu0  ;;  %v841_v47 = vpop.f32.mrb[39].mxu1 }
 0x199   : > { %956 = vst.msk [vmem:[%s1857_s17 + $0x138] sm:$0xff] %vm917_vm0, %v649_v46  ;;  %1020 = vst.msk [vmem:[%s1857_s17 + $0x338] sm:$0xff] %vm917_vm0, %v841_v47 }
 0x19b   : > { %v653_v48 = vpop.f32.mrb[40].mxu0  ;;  %v845_v49 = vpop.f32.mrb[40].mxu1 }
 0x19c   : > { %957 = vst [vmem:[%s1857_s17 + $0x140] sm:$0xff] %v653_v48  ;;  %1021 = vst [vmem:[%s1857_s17 + $0x340] sm:$0xff] %v845_v49  ;;  %v655_v50 = vpop.f32.mrb[41].mxu0  ;;  %v847_v51 = vpop.f32.mrb[41].mxu1 }
 0x19d   : > { %958 = vst.msk [vmem:[%s1857_s17 + $0x148] sm:$0xff] %vm917_vm0, %v655_v50  ;;  %1022 = vst.msk [vmem:[%s1857_s17 + $0x348] sm:$0xff] %vm917_vm0, %v847_v51 }
 0x19f   : > { %v659_v52 = vpop.f32.mrb[42].mxu0  ;;  %v851_v53 = vpop.f32.mrb[42].mxu1 }
 0x1a0   : > { %959 = vst [vmem:[%s1857_s17 + $0x150] sm:$0xff] %v659_v52  ;;  %1023 = vst [vmem:[%s1857_s17 + $0x350] sm:$0xff] %v851_v53  ;;  %v661_v54 = vpop.f32.mrb[43].mxu0  ;;  %v853_v55 = vpop.f32.mrb[43].mxu1 }
 0x1a1   : > { %960 = vst.msk [vmem:[%s1857_s17 + $0x158] sm:$0xff] %vm917_vm0, %v661_v54  ;;  %1024 = vst.msk [vmem:[%s1857_s17 + $0x358] sm:$0xff] %vm917_vm0, %v853_v55 }
 0x1a3   : > { %v665_v56 = vpop.f32.mrb[44].mxu0  ;;  %v857_v57 = vpop.f32.mrb[44].mxu1 }
 0x1a4   : > { %961 = vst [vmem:[%s1857_s17 + $0x160] sm:$0xff] %v665_v56  ;;  %1025 = vst [vmem:[%s1857_s17 + $0x360] sm:$0xff] %v857_v57  ;;  %v667_v58 = vpop.f32.mrb[45].mxu0  ;;  %v859_v59 = vpop.f32.mrb[45].mxu1 }
 0x1a5   : > { %962 = vst.msk [vmem:[%s1857_s17 + $0x168] sm:$0xff] %vm917_vm0, %v667_v58  ;;  %1026 = vst.msk [vmem:[%s1857_s17 + $0x368] sm:$0xff] %vm917_vm0, %v859_v59 }
 0x1a7   : > { %v671_v60 = vpop.f32.mrb[46].mxu0  ;;  %v863_v61 = vpop.f32.mrb[46].mxu1 }
 0x1a8   : > { %963 = vst [vmem:[%s1857_s17 + $0x170] sm:$0xff] %v671_v60  ;;  %1027 = vst [vmem:[%s1857_s17 + $0x370] sm:$0xff] %v863_v61  ;;  %v673_v62 = vpop.f32.mrb[47].mxu0  ;;  %v865_v63 = vpop.f32.mrb[47].mxu1 }
 0x1a9   : > { %964 = vst.msk [vmem:[%s1857_s17 + $0x178] sm:$0xff] %vm917_vm0, %v673_v62  ;;  %1028 = vst.msk [vmem:[%s1857_s17 + $0x378] sm:$0xff] %vm917_vm0, %v865_v63 }
 0x1ab   : > { %v677_v0 = vpop.f32.mrb[48].mxu0  ;;  %v869_v1 = vpop.f32.mrb[48].mxu1 }
 0x1ac   : > { %965 = vst [vmem:[%s1857_s17 + $0x180] sm:$0xff] %v677_v0  ;;  %1029 = vst [vmem:[%s1857_s17 + $0x380] sm:$0xff] %v869_v1  ;;  %v679_v2 = vpop.f32.mrb[49].mxu0  ;;  %v871_v3 = vpop.f32.mrb[49].mxu1 }
 0x1ad   : > { %966 = vst.msk [vmem:[%s1857_s17 + $0x188] sm:$0xff] %vm917_vm0, %v679_v2  ;;  %1030 = vst.msk [vmem:[%s1857_s17 + $0x388] sm:$0xff] %vm917_vm0, %v871_v3 }
 0x1af   : > { %v683_v4 = vpop.f32.mrb[50].mxu0  ;;  %v875_v5 = vpop.f32.mrb[50].mxu1 }
 0x1b0   : > { %967 = vst [vmem:[%s1857_s17 + $0x190] sm:$0xff] %v683_v4  ;;  %1031 = vst [vmem:[%s1857_s17 + $0x390] sm:$0xff] %v875_v5  ;;  %v685_v6 = vpop.f32.mrb[51].mxu0  ;;  %v877_v7 = vpop.f32.mrb[51].mxu1 }
 0x1b1   : > { %968 = vst.msk [vmem:[%s1857_s17 + $0x198] sm:$0xff] %vm917_vm0, %v685_v6  ;;  %1032 = vst.msk [vmem:[%s1857_s17 + $0x398] sm:$0xff] %vm917_vm0, %v877_v7 }
 0x1b3   : > { %v689_v8 = vpop.f32.mrb[52].mxu0  ;;  %v881_v9 = vpop.f32.mrb[52].mxu1 }
 0x1b4   : > { %969 = vst [vmem:[%s1857_s17 + $0x1a0] sm:$0xff] %v689_v8  ;;  %1033 = vst [vmem:[%s1857_s17 + $0x3a0] sm:$0xff] %v881_v9  ;;  %v691_v10 = vpop.f32.mrb[53].mxu0  ;;  %v883_v11 = vpop.f32.mrb[53].mxu1 }
 0x1b5   : > { %970 = vst.msk [vmem:[%s1857_s17 + $0x1a8] sm:$0xff] %vm917_vm0, %v691_v10  ;;  %1034 = vst.msk [vmem:[%s1857_s17 + $0x3a8] sm:$0xff] %vm917_vm0, %v883_v11 }
 0x1b7   : > { %v695_v12 = vpop.f32.mrb[54].mxu0  ;;  %v887_v13 = vpop.f32.mrb[54].mxu1 }
 0x1b8   : > { %971 = vst [vmem:[%s1857_s17 + $0x1b0] sm:$0xff] %v695_v12  ;;  %1035 = vst [vmem:[%s1857_s17 + $0x3b0] sm:$0xff] %v887_v13  ;;  %v697_v14 = vpop.f32.mrb[55].mxu0  ;;  %v889_v15 = vpop.f32.mrb[55].mxu1 }
 0x1b9   : > { %972 = vst.msk [vmem:[%s1857_s17 + $0x1b8] sm:$0xff] %vm917_vm0, %v697_v14  ;;  %1036 = vst.msk [vmem:[%s1857_s17 + $0x3b8] sm:$0xff] %vm917_vm0, %v889_v15 }
 0x1bb   : > { %v701_v16 = vpop.f32.mrb[56].mxu0  ;;  %v893_v17 = vpop.f32.mrb[56].mxu1 }
 0x1bc   : > { %973 = vst [vmem:[%s1857_s17 + $0x1c0] sm:$0xff] %v701_v16  ;;  %1037 = vst [vmem:[%s1857_s17 + $0x3c0] sm:$0xff] %v893_v17  ;;  %v703_v18 = vpop.f32.mrb[57].mxu0  ;;  %v895_v19 = vpop.f32.mrb[57].mxu1 }
 0x1bd   : > { %974 = vst.msk [vmem:[%s1857_s17 + $0x1c8] sm:$0xff] %vm917_vm0, %v703_v18  ;;  %1038 = vst.msk [vmem:[%s1857_s17 + $0x3c8] sm:$0xff] %vm917_vm0, %v895_v19 }
 0x1bf   : > { %v707_v20 = vpop.f32.mrb[58].mxu0  ;;  %v899_v21 = vpop.f32.mrb[58].mxu1 }
 0x1c0   : > { %975 = vst [vmem:[%s1857_s17 + $0x1d0] sm:$0xff] %v707_v20  ;;  %1039 = vst [vmem:[%s1857_s17 + $0x3d0] sm:$0xff] %v899_v21  ;;  %v709_v22 = vpop.f32.mrb[59].mxu0  ;;  %v901_v23 = vpop.f32.mrb[59].mxu1 }
 0x1c1   : > { %976 = vst.msk [vmem:[%s1857_s17 + $0x1d8] sm:$0xff] %vm917_vm0, %v709_v22  ;;  %1040 = vst.msk [vmem:[%s1857_s17 + $0x3d8] sm:$0xff] %vm917_vm0, %v901_v23 }
 0x1c3   : > { %v713_v24 = vpop.f32.mrb[60].mxu0  ;;  %v905_v25 = vpop.f32.mrb[60].mxu1 }
 0x1c4   : > { %977 = vst [vmem:[%s1857_s17 + $0x1e0] sm:$0xff] %v713_v24  ;;  %1041 = vst [vmem:[%s1857_s17 + $0x3e0] sm:$0xff] %v905_v25  ;;  %v715_v26 = vpop.f32.mrb[61].mxu0  ;;  %v907_v27 = vpop.f32.mrb[61].mxu1 }
 0x1c5   : > { %978 = vst.msk [vmem:[%s1857_s17 + $0x1e8] sm:$0xff] %vm917_vm0, %v715_v26  ;;  %1042 = vst.msk [vmem:[%s1857_s17 + $0x3e8] sm:$0xff] %vm917_vm0, %v907_v27 }
 0x1c7   : > { %v719_v28 = vpop.f32.mrb[62].mxu0  ;;  %v911_v29 = vpop.f32.mrb[62].mxu1 }
 0x1c8   : > { %979 = vst [vmem:[%s1857_s17 + $0x1f0] sm:$0xff] %v719_v28  ;;  %1043 = vst [vmem:[%s1857_s17 + $0x3f0] sm:$0xff] %v911_v29  ;;  %v721_v30 = vpop.f32.mrb[63].mxu0  ;;  %v913_v31 = vpop.f32.mrb[63].mxu1 }
 0x1c9   : > { %980 = vst.msk [vmem:[%s1857_s17 + $0x1f8] sm:$0xff] %vm917_vm0, %v721_v30  ;;  %1044 = vst.msk [vmem:[%s1857_s17 + $0x3f8] sm:$0xff] %vm917_vm0, %v913_v31 }
 0x1ca PF: > { %s15_s14 = sadd.s32 1, %s1410_s14   ;;  %s2075_s9 = smov %s1394_s10 }
 0x1cb   : > { %p12_p9 = scmp.ge.s32.totalorder %s15_s14, 4   ;;  %s2076_s10 = smov %s1398_s11 }
 0x1cc   : > { %s2077_s11 = smov %s1479_s21  ;;  %s2078_s12 = smov %s1406_s13 }
 0x1cd   : > { %s2079_s13 = smov %s2081_s16  ;;  %14 = sbr.rel (!%p12_p9) target bundleno = 4 (0x4), region = 71 }
 0x1d4   :  { %1077 = vsyncpa [#allocation3], 1 }
 0x1d5   :  { %1079 = vsyncpa [#allocation3 + $0x1], 1 }

</bundles_post_ra>
